<compile_context>
chip_gen: v7x
topology: tpu7x:2x2x1
jax: 0.10.0
libtpu: 0.0.40
codegen_flags: <defaults>
</compile_context>

<pallas_src>
import math

import numpy as np

import jax
import jax.numpy as jnp
from jax.experimental import pallas as pl
from jax.experimental.pallas import tpu as pltpu


H = 128      # lane-padded feature width for every node-level matrix (32/64/128 -> 128)
TM = 128     # node-row tile of the fused GIN-conv kernel
TK = 128     # neighbour (reduction) tile of (A+I) @ x
RATIO = 0.8  # TopKPooling ratio


def _round_up(v, m):
    return ((v + m - 1) // m) * m


# --------------------------------------------------------------------------- #
# Kernel 1: fused GINConv (+ outer ReLU) + TopKPooling score projection        #
# --------------------------------------------------------------------------- #
def _gin_stage_kernel(a_ref, x_ref, w1_ref, t1_ref, w2_ref, t2_ref, wp_ref,
                      h_ref, s_ref, acc_ref):
    k = pl.program_id(1)

    @pl.when(k == 0)
    def _():
        acc_ref[...] = jnp.zeros_like(acc_ref)

    # (A + I) @ x accumulation over neighbour tiles (bf16 MXU, f32 accumulate)
    acc_ref[...] += jnp.dot(a_ref[...], x_ref[...].astype(jnp.bfloat16),
                            preferred_element_type=jnp.float32)

    @pl.when(k == pl.num_programs(1) - 1)
    def _():
        agg = acc_ref[...]                                   # f32
        # GIN MLP: Linear+BN(eval) folded -> single weight+shift, then ReLU (twice).
        h1 = jnp.maximum(
            jnp.dot(agg.astype(jnp.bfloat16), w1_ref[...],
                    preferred_element_type=jnp.float32) + t1_ref[...], 0.0)
        h2 = jnp.maximum(
            jnp.dot(h1.astype(jnp.bfloat16), w2_ref[...],
                    preferred_element_type=jnp.float32) + t2_ref[...], 0.0)
        h_ref[...] = h2
        # TopKPooling score: tanh(h . w / ||w||); w/||w|| sits in column 0 of wp.
        s_ref[...] = jnp.tanh(jnp.dot(h2, wp_ref[...],
                                      preferred_element_type=jnp.float32))


def gin_stage(a_hat, x_pad, conv_p, pool_p):
    n_pad = a_hat.shape[0]
    grid = (n_pad // TM, n_pad // TK)
    return pl.pallas_call(
        _gin_stage_kernel,
        out_shape=(jax.ShapeDtypeStruct((n_pad, H), jnp.float32),
                   jax.ShapeDtypeStruct((n_pad, H), jnp.float32)),
        grid_spec=pltpu.PrefetchScalarGridSpec(
            num_scalar_prefetch=0,
            grid=grid,
            in_specs=[
                pl.BlockSpec((TM, TK), lambda i, k: (i, k)),   # A+I tile (bf16)
                pl.BlockSpec((TK, H), lambda i, k: (k, 0)),    # x neighbour tile
                pl.BlockSpec((H, H), lambda i, k: (0, 0)),     # W1 (folded, bf16)
                pl.BlockSpec((1, H), lambda i, k: (0, 0)),     # t1 (bias+BN shift)
                pl.BlockSpec((H, H), lambda i, k: (0, 0)),     # W2 (folded, bf16)
                pl.BlockSpec((1, H), lambda i, k: (0, 0)),     # t2
                pl.BlockSpec((H, H), lambda i, k: (0, 0)),     # pool score weight
            ],
            out_specs=[
                pl.BlockSpec((TM, H), lambda i, k: (i, 0)),    # node features h
                pl.BlockSpec((TM, H), lambda i, k: (i, 0)),    # scores (column 0)
            ],
            scratch_shapes=[pltpu.VMEM((TM, H), jnp.float32)],
        ),
        compiler_params=pltpu.CompilerParams(
            dimension_semantics=("parallel", "arbitrary")),
    )(a_hat, x_pad, conv_p["w1"], conv_p["t1"], conv_p["w2"], conv_p["t2"],
      pool_p["wp"])


# --------------------------------------------------------------------------- #
# Kernel 2: fused head = 3x [global_max_pool | global_mean_pool] readouts      #
#           + decoder3 + decoder2 + decoder1 + log_softmax                     #
# --------------------------------------------------------------------------- #
def _make_head_kernel(num_graphs):
    def kernel(xs1_ref, m1_ref, mt1_ref, xs2_ref, m2_ref, mt2_ref,
               xs3_ref, m3_ref, mt3_ref,
               w3w_ref, t31_ref, w32_ref, t32_ref,
               w21_ref, w2w_ref, t21_ref, w22_ref, t22_ref,
               w1_ref, w1w_ref, b1_ref,
               o_ref, cat_ref):
        neg = jnp.float32(-1e30)

        def readout(x_ref, m_ref, mt_ref):
            # cat_ref layout: [:, 0:H] = per-graph max, [:, H:2H] = per-graph mean.
            x = x_ref[...]
            m = m_ref[...]
            cnt = jnp.maximum(jnp.sum(m, axis=1, keepdims=True), 1.0)
            cat_ref[:, H:2 * H] = jnp.dot(m, x,
                                          preferred_element_type=jnp.float32) / cnt
            for g in range(num_graphs):                       # static, small
                col = mt_ref[:, g:g + 1] > 0.0
                cat_ref[g:g + 1, 0:H] = jnp.max(jnp.where(col, x, neg),
                                                axis=0, keepdims=True)
            return cat_ref[...]

        # decoder3(x3)
        x3 = readout(xs3_ref, m3_ref, mt3_ref)
        d = jnp.maximum(jnp.dot(x3, w3w_ref[...],
                                preferred_element_type=jnp.float32) + t31_ref[...], 0.0)
        d = jnp.maximum(jnp.dot(d, w32_ref[...],
                                preferred_element_type=jnp.float32) + t32_ref[...], 0.0)

        # decoder2(x_d3 + x2)   (the sum is distributed into the first matmul)
        x2 = readout(xs2_ref, m2_ref, mt2_ref)
        d = jnp.maximum(jnp.dot(d, w21_ref[...], preferred_element_type=jnp.float32)
                        + jnp.dot(x2, w2w_ref[...], preferred_element_type=jnp.float32)
                        + t21_ref[...], 0.0)
        d = jnp.maximum(jnp.dot(d, w22_ref[...],
                                preferred_element_type=jnp.float32) + t22_ref[...], 0.0)

        # decoder1(x_d2 + x1) + log_softmax
        x1 = readout(xs1_ref, m1_ref, mt1_ref)
        z = (jnp.dot(d, w1_ref[...], preferred_element_type=jnp.float32)
             + jnp.dot(x1, w1w_ref[...], preferred_element_type=jnp.float32)
             + b1_ref[...])
        zmax = jnp.max(z, axis=-1, keepdims=True)
        o_ref[...] = z - zmax - jnp.log(jnp.sum(jnp.exp(z - zmax),
                                                axis=-1, keepdims=True))
    return kernel


def decoder_head(readouts, dec, num_graphs, num_classes):
    args = []
    for xs, m, mt in readouts:           # stages 1, 2, 3
        args += [xs, m, mt]
    args += [dec["w3w"], dec["t31"], dec["w32"], dec["t32"],
             dec["w21"], dec["w2w"], dec["t21"], dec["w22"], dec["t22"],
             dec["w1"], dec["w1w"], dec["b1"]]
    vmem = pl.BlockSpec(memory_space=pltpu.MemorySpace.VMEM)
    return pl.pallas_call(
        _make_head_kernel(num_graphs),
        out_shape=jax.ShapeDtypeStruct((num_graphs, num_classes), jnp.float32),
        in_specs=[vmem] * len(args),
        out_specs=vmem,
        scratch_shapes=[pltpu.VMEM((num_graphs, 2 * H), jnp.float32)],
    )(*args)


# --------------------------------------------------------------------------- #
# Parameter construction (deterministic synthetic weights, eval-mode BN fold)  #
# --------------------------------------------------------------------------- #
def _fold_linear_bn(key, cin, cout):
    """Linear(cin,cout) + eval-mode BatchNorm1d(cout) (mean=0, var=1) folded into
    a single (weight, shift): y = x @ w_f + t_f (ReLU applied by the caller)."""
    k = jax.random.split(key, 4)
    w = 0.1 * jax.random.normal(k[0], (cin, cout), jnp.float32)
    b = 0.1 * jax.random.normal(k[1], (cout,), jnp.float32)
    gamma = 1.0 + 0.1 * jax.random.normal(k[2], (cout,), jnp.float32)
    beta = 0.1 * jax.random.normal(k[3], (cout,), jnp.float32)
    s = gamma / jnp.sqrt(1.0 + 1e-5)
    return w * s[None, :], b * s + beta


def _pad2(a, rows, cols):
    return jnp.zeros((rows, cols), a.dtype).at[:a.shape[0], :a.shape[1]].set(a)


def init_gin_params(key, cin, cout):
    k1, k2 = jax.random.split(key)
    w1, t1 = _fold_linear_bn(k1, cin, cout)
    w2, t2 = _fold_linear_bn(k2, cout, cout)
    # Zero-padded to (H, H): padded weight columns AND padded shifts are zero so the
    # padded feature lanes stay exactly zero through ReLU (no leakage into next layer).
    return dict(
        w1=_pad2(w1, H, H).astype(jnp.bfloat16),
        t1=_pad2(t1[None, :], 1, H),
        w2=_pad2(w2, H, H).astype(jnp.bfloat16),
        t2=_pad2(t2[None, :], 1, H),
    )


def init_pool_params(key, cin):
    w = 0.1 * jax.random.normal(key, (cin,), jnp.float32)
    wn = w / (jnp.linalg.norm(w) + 1e-12)       # TopKPooling's score / ||w|| folded in
    return dict(wp=jnp.zeros((H, H), jnp.float32).at[:cin, 0].set(wn))


def _wide_from_cat(w_cat, f):
    """Weight acting on cat([max_f, mean_f]) re-laid-out for the lane-padded (2H)-wide
    in-kernel [max | mean] readout (padded rows are zero)."""
    out = w_cat.shape[1]
    ww = jnp.zeros((2 * H, out), jnp.float32)
    ww = ww.at[0:f, :].set(w_cat[0:f, :])
    ww = ww.at[H:H + f, :].set(w_cat[f:2 * f, :])
    return ww


def init_decoder_params(key, num_classes):
    k = jax.random.split(key, 6)
    w31, t31 = _fold_linear_bn(k[0], 256, 128)
    w32, t32 = _fold_linear_bn(k[1], 128, 128)
    w21, t21 = _fold_linear_bn(k[2], 128, 64)
    w22, t22 = _fold_linear_bn(k[3], 64, 64)
    w1 = 0.1 * jax.random.normal(k[4], (64, num_classes), jnp.float32)
    b1 = 0.1 * jax.random.normal(k[5], (1, num_classes), jnp.float32)
    return dict(
        w3w=_wide_from_cat(w31, 128), t31=t31[None, :], w32=w32, t32=t32[None, :],
        w21=w21, w2w=_wide_from_cat(w21, 64), t21=t21[None, :],
        w22=w22, t22=t22[None, :],
        w1=w1, w1w=_wide_from_cat(w1, 32), b1=b1,
    )


def init_params(key, num_features, num_classes):
    ks = jax.random.split(key, 7)
    return dict(
        conv1=init_gin_params(ks[0], num_features, 32),
        pool1=init_pool_params(ks[1], 32),
        conv2=init_gin_params(ks[2], 32, 64),
        pool2=init_pool_params(ks[3], 64),
        conv3=init_gin_params(ks[4], 64, 128),
        pool3=init_pool_params(ks[5], 128),
        decoder=init_decoder_params(ks[6], num_classes),
    )


# --------------------------------------------------------------------------- #
# Forward pass (GraphUNetTopK.forward, eval mode)                              #
# --------------------------------------------------------------------------- #
def edge_index_to_adjacency(edge_index, num_nodes):
    a = jnp.zeros((num_nodes, num_nodes), jnp.float32)
    a = a.at[edge_index[0], edge_index[1]].set(1.0)
    a = a.at[edge_index[1], edge_index[0]].set(1.0)        # undirected
    return a.astype(jnp.bfloat16)                          # {0,1}: exact in bf16


def graph_unet_topk_forward(params, x, edge_index, batch_np, num_graphs):
    n = int(x.shape[0])
    # PyG-style batching: nodes of each graph occupy one contiguous index range.
    counts = [int(c) for c in np.bincount(batch_np, minlength=num_graphs)]

    a_cur = edge_index_to_adjacency(edge_index, n)          # no self loops
    x_cur = jnp.zeros((n, H), jnp.float32).at[:, :x.shape[1]].set(x)

    stages = ((params["conv1"], params["pool1"]),
              (params["conv2"], params["pool2"]),
              (params["conv3"], params["pool3"]))
    readouts = []

    for conv_p, pool_p in stages:
        n_cur = int(x_cur.shape[0])
        n_pad = _round_up(n_cur, max(TM, TK))

        a_hat = (jnp.zeros((n_pad, n_pad), jnp.bfloat16).at[:n_cur, :n_cur].set(a_cur)
                 + jnp.eye(n_pad, dtype=jnp.bfloat16))       # fold GIN (1+eps)*x, eps=0
        x_pad = jnp.zeros((n_pad, H), jnp.float32).at[:n_cur, :].set(x_cur)

        h_pad, s_pad = gin_stage(a_hat, x_pad, conv_p, pool_p)
        h = h_pad[:n_cur]
        score = s_pad[:n_cur, 0]

        # TODO(synk): per-graph top-k node selection (data-dependent sizes) and the
        # permutation gathers below stay in plain JAX glue; only dense compute is Pallas.
        sel, new_counts, off = [], [], 0
        for g in range(num_graphs):
            cg = counts[g]
            kg = max(1, int(math.ceil(RATIO * cg)))
            _, loc = jax.lax.top_k(score[off:off + cg], kg)
            sel.append(off + loc)
            new_counts.append(kg)
            off += cg
        perm = jnp.concatenate(sel, axis=0)

        x_cur = h[perm] * score[perm][:, None]               # x = x[perm] * score[perm]
        a_cur = a_cur[perm][:, perm]                         # filter_adj
        counts = new_counts

        # graph-membership masks for global_max_pool / global_mean_pool
        k_tot = int(x_cur.shape[0])
        m_np = np.zeros((num_graphs, k_tot), np.float32)
        pos = 0
        for g in range(num_graphs):
            m_np[g, pos:pos + counts[g]] = 1.0
            pos += counts[g]
        readouts.append((x_cur, jnp.asarray(m_np), jnp.asarray(m_np.T)))

    num_classes = params["decoder"]["w1"].shape[1]
    return decoder_head(readouts, params["decoder"], num_graphs, num_classes)


# --------------------------------------------------------------------------- #
# Demo                                                                         #
# --------------------------------------------------------------------------- #
if __name__ == "__main__":
    key = jax.random.PRNGKey(0)
    k_param, k_x = jax.random.split(key)

    num_features = 4
    num_classes = 3
    nodes_per_graph = 16
    num_graphs = 2

    # two disjoint ring graphs with chords, contiguously batched (PyG-style)
    src, dst, batch = [], [], []
    chords = [(0, 8), (2, 10), (4, 13), (5, 11), (1, 7)]
    for g in range(num_graphs):
        off = g * nodes_per_graph
        for i in range(nodes_per_graph):
            src.append(off + i)
            dst.append(off + (i + 1) % nodes_per_graph)
        for a, b in chords:
            src.append(off + a)
            dst.append(off + b)
        batch += [g] * nodes_per_graph

    edge_index = jnp.array([src, dst], dtype=jnp.int32)          # (2, 42)
    batch_np = np.array(batch, np.int32)
    assert np.all(np.diff(batch_np) >= 0)                        # contiguous batching
    n_total = num_graphs * nodes_per_graph
    x = jax.random.normal(k_x, (n_total, num_features), jnp.float32)

    params = init_params(k_param, num_features, num_classes)

    out = graph_unet_topk_forward(params, x, edge_index, batch_np, num_graphs)
    out = jax.block_until_ready(out)

    assert out.shape == (num_graphs, num_classes)
    assert bool(jnp.all(jnp.isfinite(out)))
    # rows are log-probabilities -> exp must normalise to 1
    assert bool(jnp.all(jnp.abs(jnp.sum(jnp.exp(out), axis=-1) - 1.0) < 1e-3))
    print("KERNEL_OK")
</pallas_src>

<mosaic_0001>
module attributes {stable_mosaic.version = 11 : i64} {
  func.func @_gin_stage_kernel(%arg0: i32, %arg1: i32, %arg2: memref<128x128xbf16, #tpu.memory_space<vmem>>, %arg3: memref<128x128xf32, #tpu.memory_space<vmem>>, %arg4: memref<128x128xbf16, #tpu.memory_space<vmem>>, %arg5: memref<1x128xf32, #tpu.memory_space<vmem>>, %arg6: memref<128x128xbf16, #tpu.memory_space<vmem>>, %arg7: memref<1x128xf32, #tpu.memory_space<vmem>>, %arg8: memref<128x128xf32, #tpu.memory_space<vmem>>, %arg9: memref<128x128xf32, #tpu.memory_space<vmem>>, %arg10: memref<128x128xf32, #tpu.memory_space<vmem>>, %arg11: memref<128x128xf32, #tpu.memory_space<vmem>>) attributes {dimension_semantics = [#tpu.dimension_semantics<parallel>, #tpu.dimension_semantics<arbitrary>], iteration_bounds = array<i64: 1, 1>, scalar_prefetch = 0 : i64, scratch_operands = 1 : i64, tpu.core_type = #tpu.core_type<tc>, window_params = [{transform_indices = @transform_0, window_bounds = array<i64: 128, 128>}, {transform_indices = @transform_1, window_bounds = array<i64: 128, 128>}, {pipeline_mode = #tpu.pipeline_mode<synchronous>, transform_indices = @transform_2, window_bounds = array<i64: 128, 128>}, {pipeline_mode = #tpu.pipeline_mode<synchronous>, transform_indices = @transform_3, window_bounds = array<i64: 1, 128>}, {pipeline_mode = #tpu.pipeline_mode<synchronous>, transform_indices = @transform_4, window_bounds = array<i64: 128, 128>}, {pipeline_mode = #tpu.pipeline_mode<synchronous>, transform_indices = @transform_5, window_bounds = array<i64: 1, 128>}, {pipeline_mode = #tpu.pipeline_mode<synchronous>, transform_indices = @transform_6, window_bounds = array<i64: 128, 128>}, {transform_indices = @transform_7, window_bounds = array<i64: 128, 128>}, {transform_indices = @transform_8, window_bounds = array<i64: 128, 128>}]} {
    %c0_i32 = arith.constant 0 : i32
    %0 = arith.cmpi eq, %arg1, %c0_i32 : i32
    %1 = arith.extui %0 : i1 to i32
    %c0_i32_0 = arith.constant 0 : i32
    %2 = arith.cmpi ne, %1, %c0_i32_0 : i32
    scf.if %2 {
      %cst_10 = arith.constant 0.000000e+00 : f32
      %13 = vector.broadcast %cst_10 : f32 to vector<128x128xf32>
      %c0_11 = arith.constant 0 : index
      %c0_12 = arith.constant 0 : index
      %14 = vector.load %arg11[%c0_11, %c0_12] : memref<128x128xf32, #tpu.memory_space<vmem>>, vector<128x128xf32>
      tpu.vector_store %arg11[%c0_11, %c0_12], %13 {strides = array<i32>} : memref<128x128xf32, #tpu.memory_space<vmem>>, vector<128x128xf32>,
    } else {
    }
    %c0 = arith.constant 0 : index
    %c0_1 = arith.constant 0 : index
    %3 = vector.load %arg11[%c0, %c0_1] : memref<128x128xf32, #tpu.memory_space<vmem>>, vector<128x128xf32>
    %c0_2 = arith.constant 0 : index
    %c0_3 = arith.constant 0 : index
    %4 = vector.load %arg2[%c0_2, %c0_3] : memref<128x128xbf16, #tpu.memory_space<vmem>>, vector<128x128xbf16>
    %c0_4 = arith.constant 0 : index
    %c0_5 = arith.constant 0 : index
    %5 = vector.load %arg3[%c0_4, %c0_5] : memref<128x128xf32, #tpu.memory_space<vmem>>, vector<128x128xf32>
    %6 = arith.truncf %5 : vector<128x128xf32> to vector<128x128xbf16>
    %cst = arith.constant dense<0.000000e+00> : vector<128x128xf32>
    %7 = tpu.matmul %4, %6, %cst {dimension_numbers = #tpu.dot_dimension_numbers<[1], [0], [0], [1], [0, 0, 1, 1], [], []>} : vector<128x128xbf16>, vector<128x128xbf16>, vector<128x128xf32> -> vector<128x128xf32>
    %8 = arith.addf %3, %7 : vector<128x128xf32>
    %c0_6 = arith.constant 0 : index
    %c0_7 = arith.constant 0 : index
    %9 = vector.load %arg11[%c0_6, %c0_7] : memref<128x128xf32, #tpu.memory_space<vmem>>, vector<128x128xf32>
    tpu.vector_store %arg11[%c0_6, %c0_7], %8 {strides = array<i32>} : memref<128x128xf32, #tpu.memory_space<vmem>>, vector<128x128xf32>,
    %c0_i32_8 = arith.constant 0 : i32
    %10 = arith.cmpi eq, %arg1, %c0_i32_8 : i32
    %11 = arith.extui %10 : i1 to i32
    %c0_i32_9 = arith.constant 0 : i32
    %12 = arith.cmpi ne, %11, %c0_i32_9 : i32
    scf.if %12 {
      %c0_10 = arith.constant 0 : index
      %c0_11 = arith.constant 0 : index
      %13 = vector.load %arg11[%c0_10, %c0_11] : memref<128x128xf32, #tpu.memory_space<vmem>>, vector<128x128xf32>
      %14 = arith.truncf %13 : vector<128x128xf32> to vector<128x128xbf16>
      %c0_12 = arith.constant 0 : index
      %c0_13 = arith.constant 0 : index
      %15 = vector.load %arg4[%c0_12, %c0_13] : memref<128x128xbf16, #tpu.memory_space<vmem>>, vector<128x128xbf16>
      %cst_14 = arith.constant dense<0.000000e+00> : vector<128x128xf32>
      %16 = tpu.matmul %14, %15, %cst_14 {dimension_numbers = #tpu.dot_dimension_numbers<[1], [0], [0], [1], [0, 0, 1, 1], [], []>} : vector<128x128xbf16>, vector<128x128xbf16>, vector<128x128xf32> -> vector<128x128xf32>
      %c0_15 = arith.constant 0 : index
      %c0_16 = arith.constant 0 : index
      %17 = vector.load %arg5[%c0_15, %c0_16] : memref<1x128xf32, #tpu.memory_space<vmem>>, vector<1x128xf32>
      %18 = vector.broadcast %17 : vector<1x128xf32> to vector<128x128xf32>
      %19 = arith.addf %16, %18 : vector<128x128xf32>
      %cst_17 = arith.constant 0.000000e+00 : f32
      %20 = vector.broadcast %cst_17 : f32 to vector<128x128xf32>
      %21 = arith.maximumf %19, %20 : vector<128x128xf32>
      %22 = arith.truncf %21 : vector<128x128xf32> to vector<128x128xbf16>
      %c0_18 = arith.constant 0 : index
      %c0_19 = arith.constant 0 : index
      %23 = vector.load %arg6[%c0_18, %c0_19] : memref<128x128xbf16, #tpu.memory_space<vmem>>, vector<128x128xbf16>
      %cst_20 = arith.constant dense<0.000000e+00> : vector<128x128xf32>
      %24 = tpu.matmul %22, %23, %cst_20 {dimension_numbers = #tpu.dot_dimension_numbers<[1], [0], [0], [1], [0, 0, 1, 1], [], []>} : vector<128x128xbf16>, vector<128x128xbf16>, vector<128x128xf32> -> vector<128x128xf32>
      %c0_21 = arith.constant 0 : index
      %c0_22 = arith.constant 0 : index
      %25 = vector.load %arg7[%c0_21, %c0_22] : memref<1x128xf32, #tpu.memory_space<vmem>>, vector<1x128xf32>
      %26 = vector.broadcast %25 : vector<1x128xf32> to vector<128x128xf32>
      %27 = arith.addf %24, %26 : vector<128x128xf32>
      %cst_23 = arith.constant 0.000000e+00 : f32
      %28 = vector.broadcast %cst_23 : f32 to vector<128x128xf32>
      %29 = arith.maximumf %27, %28 : vector<128x128xf32>
      %c0_24 = arith.constant 0 : index
      %c0_25 = arith.constant 0 : index
      %30 = vector.load %arg9[%c0_24, %c0_25] : memref<128x128xf32, #tpu.memory_space<vmem>>, vector<128x128xf32>
      tpu.vector_store %arg9[%c0_24, %c0_25], %29 {strides = array<i32>} : memref<128x128xf32, #tpu.memory_space<vmem>>, vector<128x128xf32>,
      %c0_26 = arith.constant 0 : index
      %c0_27 = arith.constant 0 : index
      %31 = vector.load %arg8[%c0_26, %c0_27] : memref<128x128xf32, #tpu.memory_space<vmem>>, vector<128x128xf32>
      %cst_28 = arith.constant dense<0.000000e+00> : vector<128x128xf32>
      %32 = tpu.matmul %29, %31, %cst_28 {dimension_numbers = #tpu.dot_dimension_numbers<[1], [0], [0], [1], [0, 0, 1, 1], [], []>} : vector<128x128xf32>, vector<128x128xf32>, vector<128x128xf32> -> vector<128x128xf32>
      %33 = math.tanh %32 : vector<128x128xf32>
      %c0_29 = arith.constant 0 : index
      %c0_30 = arith.constant 0 : index
      %34 = vector.load %arg10[%c0_29, %c0_30] : memref<128x128xf32, #tpu.memory_space<vmem>>, vector<128x128xf32>
      tpu.vector_store %arg10[%c0_29, %c0_30], %33 {strides = array<i32>} : memref<128x128xf32, #tpu.memory_space<vmem>>, vector<128x128xf32>,
    } else {
    }
    return
  }
  func.func @transform_0(%arg0: i32, %arg1: i32) -> (i32, i32) {
    %c0_i32 = arith.constant 0 : i32
    return %arg0, %arg1 : i32, i32
  }
  func.func @transform_1(%arg0: i32, %arg1: i32) -> (i32, i32) {
    %c0_i32 = arith.constant 0 : i32
    %c0_i32_0 = arith.constant 0 : i32
    return %arg1, %c0_i32 : i32, i32
  }
  func.func @transform_2(%arg0: i32, %arg1: i32) -> (i32, i32) {
    %c0_i32 = arith.constant 0 : i32
    %c0_i32_0 = arith.constant 0 : i32
    %c0_i32_1 = arith.constant 0 : i32
    return %c0_i32, %c0_i32_0 : i32, i32
  }
  func.func @transform_3(%arg0: i32, %arg1: i32) -> (i32, i32) {
    %c0_i32 = arith.constant 0 : i32
    %c0_i32_0 = arith.constant 0 : i32
    %c0_i32_1 = arith.constant 0 : i32
    return %c0_i32, %c0_i32_0 : i32, i32
  }
  func.func @transform_4(%arg0: i32, %arg1: i32) -> (i32, i32) {
    %c0_i32 = arith.constant 0 : i32
    %c0_i32_0 = arith.constant 0 : i32
    %c0_i32_1 = arith.constant 0 : i32
    return %c0_i32, %c0_i32_0 : i32, i32
  }
  func.func @transform_5(%arg0: i32, %arg1: i32) -> (i32, i32) {
    %c0_i32 = arith.constant 0 : i32
    %c0_i32_0 = arith.constant 0 : i32
    %c0_i32_1 = arith.constant 0 : i32
    return %c0_i32, %c0_i32_0 : i32, i32
  }
  func.func @transform_6(%arg0: i32, %arg1: i32) -> (i32, i32) {
    %c0_i32 = arith.constant 0 : i32
    %c0_i32_0 = arith.constant 0 : i32
    %c0_i32_1 = arith.constant 0 : i32
    return %c0_i32, %c0_i32_0 : i32, i32
  }
  func.func @transform_7(%arg0: i32, %arg1: i32) -> (i32, i32) {
    %c0_i32 = arith.constant 0 : i32
    %c0_i32_0 = arith.constant 0 : i32
    return %arg0, %c0_i32 : i32, i32
  }
  func.func @transform_8(%arg0: i32, %arg1: i32) -> (i32, i32) {
    %c0_i32 = arith.constant 0 : i32
    %c0_i32_0 = arith.constant 0 : i32
    return %arg0, %c0_i32 : i32, i32
  }
}

</mosaic_0001>

<bundles_post_ra>
// kernel: tpu_custom_call.1
= control target key start
LH: loop header
LB: loop body
LE: loop exit
PB: predicated region body
PF: predicated region fallthrough
CT: control target
= control target key end

     0   :  { %14 = vsyncpa [#allocation4], 0  ;;  %s1705_s0 = inlined_call_operand.hbm [shape: bf16[128,128], index: 0, kind: input, shape index: {}]   ;;  %s1706_s1 = inlined_call_operand.hbm [shape: f32[128,128], index: 1, kind: input, shape index: {}]   ;;  %s1707_s2 = inlined_call_operand.hbm [shape: bf16[128,128], index: 2, kind: input, shape index: {}]   ;;  %s1708_s3 = inlined_call_operand.vmem [shape: f32[1,128], index: 3, kind: input, shape index: {}]   ;;  %s1709_s4 = inlined_call_operand.hbm [shape: bf16[128,128], index: 4, kind: input, shape index: {}]   ;;  %s1710_s5 = inlined_call_operand.vmem [shape: f32[1,128], index: 5, kind: input, shape index: {}]   ;;  %s1711_s6 = inlined_call_operand.hbm [shape: f32[128,128], index: 6, kind: input, shape index: {}]   ;;  %s1712_s7 = inlined_call_operand.hbm [shape: f32[128,128], index: 7, kind: output, shape index: {0}]   ;;  %s1713_s8 = inlined_call_operand.hbm [shape: f32[128,128], index: 8, kind: output, shape index: {1}]  }
   0x1   :  { %15 = vsyncpa [#allocation7], 0 }
   0x2   :  { %16 = vsyncpa [#allocation10], 0 }
   0x3   :  { %17 = vsyncpa [#allocation5], 0 }
   0x4   :  { %18 = vsyncpa [#allocation14], 0  ;;  %s1520_s27 = smov [#allocation6]   ;;  %s1356_s9 = scalar_lea.hbm %s1706_s1, 2048 }
   0x5   :  { %s36_s28 = sshll.u32 %s1520_s27, 4  ;;  %p1357_p0 = scmp.ne.s32.totalorder %s1706_s1, %s1356_s9  ;;  %s37_s28 = int_to_ptr.vmem [resolvable:$true] %s36_s28 }
   0x6   :  { %p1360_p1 = scmp.lt.u32.totalorder %s1356_s9, %s1706_s1 }
   0x8   :  { %p1362_p2 = pnand %p1360_p1, %p1357_p0 }
   0xa   :  { %1365 = shalt.err (!%p1362_p2)
}
   0xb   :  { %s1366_s14 = scalar_lea.vmem %s37_s28, 2048  ;;  %p1371_p4 = scmp.lt.s32.totalorder %s37_s28, %s37_s28 }
   0xc   :  { %p1367_p3 = scmp.ne.s32.totalorder %s37_s28, %s1366_s14  ;;  %p1372_p5 = scmp.lt.s32.totalorder %s1366_s14, %s1366_s14 }
   0xe   :  { %p1373_p6 = por %p1372_p5, %p1371_p4 }
  0x10   :  { %p1374_p7 = pnand %p1373_p6, %p1367_p3 }
  0x12   :  { %1377 = shalt.err (!%p1374_p7)
}
  0x13   :  { %s1521_s15 = smov 128   ;;  %s1522_s16 = smov 8  }
  0x14   :  { %42 = dma.hbm_to_vmem [thread:$0]  %s1706_s1, 2048, %s37_s28, [#allocation7], %s1521_s15, %s1521_s15, %s1522_s16  }
  0x15   :  { %s1523_s19 = smov [#allocation9]   ;;  %s1524_s21 = smov [#allocation3]  }
  0x16   :  { %s62_s20 = sshll.u32 %s1523_s19, 4  ;;  %s24_s22 = sshll.u32 %s1524_s21, 4  ;;  %s63_s20 = int_to_ptr.vmem [resolvable:$true] %s62_s20  ;;  %s25_s22 = int_to_ptr.vmem [resolvable:$true] %s24_s22 }
  0x17   :  { %s1378_s25 = scalar_lea.hbm %s1709_s4, 1024 }
  0x18   :  { %p1379_p8 = scmp.ne.s32.totalorder %s1709_s4, %s1378_s25  ;;  %p1382_p9 = scmp.lt.u32.totalorder %s1378_s25, %s1709_s4 }
  0x1a   :  { %p1384_p10 = pnand %p1382_p9, %p1379_p8 }
  0x1c   :  { %1387 = shalt.err (!%p1384_p10)
}
  0x1d   :  { %s1388_s1 = scalar_lea.vmem %s63_s20, 1024  ;;  %p1393_p12 = scmp.lt.s32.totalorder %s63_s20, %s63_s20 }
  0x1e   :  { %p1389_p11 = scmp.ne.s32.totalorder %s63_s20, %s1388_s1  ;;  %p1394_p13 = scmp.lt.s32.totalorder %s1388_s1, %s1388_s1 }
  0x20   :  { %p1395_p0 = por %p1394_p13, %p1393_p12 }
  0x22   :  { %p1396_p1 = pnand %p1395_p0, %p1389_p11 }
  0x24   :  { %1399 = shalt.err (!%p1396_p1)
}
  0x25   :  { %s1525_s28 = smov 64   ;;  %s1526_s9 = smov 4  }
  0x26   :  { %68 = dma.hbm_to_vmem [thread:$0]  %s1709_s4, 1024, %s63_s20, [#allocation10], %s1525_s28, %s1525_s28, %s1526_s9  }
  0x27   :  { %s1400_s14 = scalar_lea.hbm %s1705_s0, 1024 }
  0x28   :  { %p1401_p2 = scmp.ne.s32.totalorder %s1705_s0, %s1400_s14  ;;  %p1404_p3 = scmp.lt.u32.totalorder %s1400_s14, %s1705_s0 }
  0x2a   :  { %p1406_p4 = pnand %p1404_p3, %p1401_p2 }
  0x2c   :  { %1409 = shalt.err (!%p1406_p4)
}
  0x2d   :  { %s1410_s23 = scalar_lea.vmem %s25_s22, 1024  ;;  %p1415_p6 = scmp.lt.s32.totalorder %s25_s22, %s25_s22 }
  0x2e   :  { %p1411_p5 = scmp.ne.s32.totalorder %s25_s22, %s1410_s23  ;;  %p1416_p7 = scmp.lt.s32.totalorder %s1410_s23, %s1410_s23 }
  0x30   :  { %p1417_p8 = por %p1416_p7, %p1415_p6 }
  0x32   :  { %p1418_p9 = pnand %p1417_p8, %p1411_p5 }
  0x34   :  { %1421 = shalt.err (!%p1418_p9)
}
  0x35   :  { %30 = dma.hbm_to_vmem [thread:$0]  %s1705_s0, 1024, %s25_s22, [#allocation4], %s1525_s28, %s1525_s28, %s1526_s9  }
  0x36   :  { %s1527_s24 = smov [#allocation8]   ;;  %s1528_s26 = smov [#allocation11]  }
  0x37   :  { %s48_s25 = sshll.u32 %s1527_s24, 4  ;;  %s76_s27 = sshll.u32 %s1528_s26, 4  ;;  %s49_s25 = int_to_ptr.vmem [resolvable:$true] %s48_s25  ;;  %s77_s27 = int_to_ptr.vmem [resolvable:$true] %s76_s27 }
  0x38   :  { %s1422_s1 = scalar_lea.hbm %s1707_s2, 1024 }
  0x39   :  { %p1423_p10 = scmp.ne.s32.totalorder %s1707_s2, %s1422_s1  ;;  %p1426_p11 = scmp.lt.u32.totalorder %s1422_s1, %s1707_s2 }
  0x3b   :  { %p1428_p12 = pnand %p1426_p11, %p1423_p10 }
  0x3d   :  { %1431 = shalt.err (!%p1428_p12)
}
  0x3e   :  { %s1432_s0 = scalar_lea.vmem %s49_s25, 1024  ;;  %p1437_p0 = scmp.lt.s32.totalorder %s49_s25, %s49_s25 }
  0x3f   :  { %p1433_p13 = scmp.ne.s32.totalorder %s49_s25, %s1432_s0  ;;  %p1438_p1 = scmp.lt.s32.totalorder %s1432_s0, %s1432_s0 }
  0x41   :  { %p1439_p2 = por %p1438_p1, %p1437_p0 }
  0x43   :  { %p1440_p3 = pnand %p1439_p2, %p1433_p13 }
  0x45   :  { %1443 = shalt.err (!%p1440_p3)
}
  0x46   :  { %54 = dma.hbm_to_vmem [thread:$0]  %s1707_s2, 1024, %s49_s25, [#allocation7], %s1525_s28, %s1525_s28, %s1526_s9  }
  0x47   :  { %s1444_s19 = scalar_lea.hbm %s1711_s6, 2048 }
  0x48   :  { %p1445_p4 = scmp.ne.s32.totalorder %s1711_s6, %s1444_s19  ;;  %p1448_p5 = scmp.lt.u32.totalorder %s1444_s19, %s1711_s6 }
  0x4a   :  { %p1450_p6 = pnand %p1448_p5, %p1445_p4 }
  0x4c   :  { %1453 = shalt.err (!%p1450_p6)
}
  0x4d   :  { %s1454_s24 = scalar_lea.vmem %s77_s27, 2048  ;;  %p1459_p8 = scmp.lt.s32.totalorder %s77_s27, %s77_s27 }
  0x4e   :  { %p1455_p7 = scmp.ne.s32.totalorder %s77_s27, %s1454_s24  ;;  %p1460_p9 = scmp.lt.s32.totalorder %s1454_s24, %s1454_s24 }
  0x50   :  { %p1461_p10 = por %p1460_p9, %p1459_p8 }
  0x52   :  { %p1462_p11 = pnand %p1461_p10, %p1455_p7 }
  0x54   :  { %1465 = shalt.err (!%p1462_p11)
}
  0x55   :  { %82 = dma.hbm_to_vmem [thread:$0]  %s1711_s6, 2048, %s77_s27, [#allocation10], %s1521_s15, %s1521_s15, %s1522_s16  }
  0x56   :  { %1510 = dma.done.wait [#allocation4], 1024  }
  0x57   :  { %1511 = vsyncadd [#allocation4], 4294966272 }
  0x58   :  { %1512 = dma.done.wait [#allocation7], 3072  }
  0x59   :  { %1513 = vsyncadd [#allocation7], 4294964224 }
  0x5a   :  { %1514 = dma.done.wait [#allocation10], 3072  }
  0x5b   :  { %1515 = vsyncadd [#allocation10], 4294964224  ;;  %v151_v0 = vld [vmem:[#allocation6] sm:$0xff]  ;;  %v152_v1 = vld [vmem:[#allocation6 + $0x8] sm:$0xff] }
  0x5c   :  { %v153_v2 = vld [vmem:[#allocation6 + $0x10] sm:$0xff]  ;;  %v167_v3 = vpack.c.bf16 %v152_v1, %v151_v0  ;;  %v154_v4 = vld [vmem:[#allocation6 + $0x18] sm:$0xff]  ;;  %v155_v6 = vld [vmem:[#allocation6 + $0x20] sm:$0xff] }
  0x5d   :  { %v168_v5 = vpack.c.bf16 %v154_v4, %v153_v2  ;;  %v156_v7 = vld [vmem:[#allocation6 + $0x28] sm:$0xff]  ;;  %v157_v8 = vld [vmem:[#allocation6 + $0x30] sm:$0xff]  ;;  %v158_v10 = vld [vmem:[#allocation6 + $0x38] sm:$0xff] }
  0x5e   :  { %1105 = vmatprep.subr.bf16.mxu0 %v167_v3  ;;  %v169_v9 = vpack.c.bf16 %v156_v7, %v155_v6  ;;  %v1300_v11 = vld [vmem:[#allocation3] sm:$0xff]   ;;  %v170_v12 = vpack.c.bf16 %v158_v10, %v157_v8  ;;  %v160_v14 = vld [vmem:[#allocation6 + $0x48] sm:$0xff]  ;;  %v161_v15 = vld [vmem:[#allocation6 + $0x50] sm:$0xff] }
  0x5f   :  { %1106 = vmatpush3.bf16.msra.mxu0 %v167_v3  ;;  %1121 = vmatprep.mubr.bf16.mxu0 %v1300_v11  ;;  %v159_v13 = vld [vmem:[#allocation6 + $0x40] sm:$0xff]  ;;  %v162_v17 = vld [vmem:[#allocation6 + $0x58] sm:$0xff]  ;;  %v1309_v19 = vld [vmem:[#allocation8 + $0x8] sm:$0xff]  }
  0x60   :  { %1107 = vmatprep.subr.bf16.mxu0 %v168_v5  ;;  %v171_v16 = vpack.c.bf16 %v160_v14, %v159_v13  ;;  %v1308_v18 = vld [vmem:[#allocation8] sm:$0xff]   ;;  %v172_v21 = vpack.c.bf16 %v162_v17, %v161_v15  ;;  %v164_v22 = vld [vmem:[#allocation6 + $0x68] sm:$0xff]  ;;  %v1310_v23 = vld [vmem:[#allocation8 + $0x10] sm:$0xff]  }
  0x61   :  { %v163_v20 = vld [vmem:[#allocation6 + $0x60] sm:$0xff]  ;;  %1137 = vmatprep.subr.bf16.mxu1 %v1308_v18  ;;  %v165_v24 = vld [vmem:[#allocation6 + $0x70] sm:$0xff]  ;;  %v166_v25 = vld [vmem:[#allocation6 + $0x78] sm:$0xff] }
  0x62   :  { %1138 = vmatpush3.bf16.msra.mxu1 %v1308_v18  ;;  %v1311_v26 = vld [vmem:[#allocation8 + $0x18] sm:$0xff]   ;;  %v173_v27 = vpack.c.bf16 %v164_v22, %v163_v20  ;;  %v174_v28 = vpack.c.bf16 %v166_v25, %v165_v24  ;;  %v1312_v29 = vld [vmem:[#allocation8 + $0x20] sm:$0xff]   ;;  %v1313_v30 = vld [vmem:[#allocation8 + $0x28] sm:$0xff]  }
  0x63   :  { %1108 = vmatpush3.bf16.msra.mxu0 %v168_v5  ;;  %1139 = vmatprep.subr.bf16.mxu1 %v1309_v19  ;;  %v1301_v31 = vld [vmem:[#allocation3 + $0x8] sm:$0xff]   ;;  %v1302_v32 = vld [vmem:[#allocation3 + $0x10] sm:$0xff]   ;;  %v1303_v34 = vld [vmem:[#allocation3 + $0x18] sm:$0xff]  }
  0x64   :  { %1109 = vmatprep.subr.bf16.mxu0 %v169_v9  ;;  %v1314_v33 = vld [vmem:[#allocation8 + $0x30] sm:$0xff]   ;;  %v1304_v35 = vld [vmem:[#allocation3 + $0x20] sm:$0xff]   ;;  %v1305_v36 = vld [vmem:[#allocation3 + $0x28] sm:$0xff]  }
  0x65   :  { %v1306_v37 = vld [vmem:[#allocation3 + $0x30] sm:$0xff]   ;;  %v1307_v38 = vld [vmem:[#allocation3 + $0x38] sm:$0xff]   ;;  %v1316_v40 = vld [vmem:[#allocation9] sm:$0xff]  }
  0x66   :  { %1140 = vmatpush3.bf16.msra.mxu1 %v1309_v19  ;;  %v1315_v39 = vld [vmem:[#allocation8 + $0x38] sm:$0xff]   ;;  %v1317_v41 = vld [vmem:[#allocation9 + $0x8] sm:$0xff]   ;;  %v1318_v42 = vld [vmem:[#allocation9 + $0x10] sm:$0xff]  }
  0x67   :  { %1110 = vmatpush3.bf16.msra.mxu0 %v169_v9  ;;  %1141 = vmatprep.subr.bf16.mxu1 %v1310_v23  ;;  %v1319_v43 = vld [vmem:[#allocation9 + $0x18] sm:$0xff]   ;;  %v1320_v44 = vld [vmem:[#allocation9 + $0x20] sm:$0xff]   ;;  %v1321_v45 = vld [vmem:[#allocation9 + $0x28] sm:$0xff]  }
  0x68   :  { %1111 = vmatprep.subr.bf16.mxu0 %v170_v12  ;;  %v1322_v6 = vld [vmem:[#allocation9 + $0x30] sm:$0xff]   ;;  %v1323_v7 = vld [vmem:[#allocation9 + $0x38] sm:$0xff]   ;;  %v771_v8 = vld [vmem:[#allocation11] sm:$0xff] }
  0x69   :  { %v772_v9 = vld [vmem:[#allocation11 + $0x8] sm:$0xff]  ;;  %v773_v10 = vld [vmem:[#allocation11 + $0x10] sm:$0xff]  ;;  %v775_v14 = vld [vmem:[#allocation11 + $0x20] sm:$0xff] }
  0x6a   :  { %1142 = vmatpush3.bf16.msra.mxu1 %v1310_v23  ;;  %v1257_v11 = vpack.c.bf16 %v772_v9, %v771_v8  ;;  %v776_v15 = vld [vmem:[#allocation11 + $0x28] sm:$0xff]  ;;  %v777_v17 = vld [vmem:[#allocation11 + $0x30] sm:$0xff]  ;;  %v778_v18 = vld [vmem:[#allocation11 + $0x38] sm:$0xff] }
  0x6b   :  { %1112 = vmatpush3.bf16.msra.mxu0 %v170_v12  ;;  %1143 = vmatprep.subr.bf16.mxu1 %v1311_v26  ;;  %v774_v12 = vld [vmem:[#allocation11 + $0x18] sm:$0xff]  ;;  %v1269_v19 = vpack.c.bf16 %v778_v18, %v777_v17  ;;  %v779_v20 = vld [vmem:[#allocation11 + $0x40] sm:$0xff]  ;;  %v781_v23 = vld [vmem:[#allocation11 + $0x50] sm:$0xff] }
  0x6c   :  { %1113 = vmatprep.subr.bf16.mxu0 %v171_v16  ;;  %v1261_v13 = vpack.c.bf16 %v774_v12, %v773_v10  ;;  %v782_v24 = vld [vmem:[#allocation11 + $0x58] sm:$0xff] }
  0x6d   :  { %v1277_v25 = vpack.c.bf16 %v782_v24, %v781_v23  ;;  %v786_v23 = vld [vmem:[#allocation11 + $0x78] sm:$0xff] }
  0x6e   :  { %1144 = vmatpush3.bf16.msra.mxu1 %v1311_v26  ;;  %v783_v26 = vld [vmem:[#allocation11 + $0x60] sm:$0xff] }
  0x6f   :  { %1114 = vmatpush3.bf16.msra.mxu0 %v171_v16  ;;  %1145 = vmatprep.subr.bf16.mxu1 %v1312_v29  ;;  %v1265_v16 = vpack.c.bf16 %v776_v15, %v775_v14 }
  0x70   :  { %1115 = vmatprep.subr.bf16.mxu0 %v172_v21 }
  0x72   :  { %1146 = vmatpush3.bf16.msra.mxu1 %v1312_v29  ;;  %v1007_v29 = vld [vmem:[%s1708_s3] ss:$0 sm:$0xff] }
  0x73   :  { %1116 = vmatpush3.bf16.msra.mxu0 %v172_v21  ;;  %1147 = vmatprep.subr.bf16.mxu1 %v1313_v30  ;;  %v780_v21 = vld [vmem:[#allocation11 + $0x48] sm:$0xff] }
  0x74   :  { %1117 = vmatprep.subr.bf16.mxu0 %v173_v27  ;;  %v1273_v22 = vpack.c.bf16 %v780_v21, %v779_v20 }
  0x76   :  { %1148 = vmatpush3.bf16.msra.mxu1 %v1313_v30 }
  0x77   :  { %1118 = vmatpush3.bf16.msra.mxu0 %v173_v27  ;;  %1149 = vmatprep.subr.bf16.mxu1 %v1314_v33  ;;  %v784_v27 = vld [vmem:[#allocation11 + $0x68] sm:$0xff] }
  0x78   :  { %1119 = vmatprep.subr.bf16.mxu0 %v174_v28 }
  0x7a   :  { %1150 = vmatpush3.bf16.msra.mxu1 %v1314_v33 }
  0x7b   :  { %1120 = vmatpush3.bf16.msra.mxu0 %v174_v28  ;;  %1151 = vmatprep.subr.bf16.mxu1 %v1315_v39  ;;  %v1281_v28 = vpack.c.bf16 %v784_v27, %v783_v26 }
  0x7c   :  { %1169 = vmatprep.subr.bf16.mxu0 %v1316_v40 }
  0x7e   :  { %1122 = vmatmul.mubr.bf16.vlgmr.msra.gmra.mrb[0].mxu0 %v1301_v31  ;;  %1152 = vmatpush3.bf16.msra.mxu1 %v1315_v39 }
  0x7f   :  { %1125 = vmatprep.mubr.bf16.mxu0 %v1302_v32  ;;  %1170 = vmatpush3.bf16.msra.mxu0 %v1316_v40 }
  0x80   :  { %1171 = vmatprep.subr.bf16.mxu0 %v1317_v41  ;;  %1258 = vmatprep.subr.bf16.mxu1 %v1257_v11 }
  0x83   :  { %1172 = vmatpush3.bf16.msra.mxu0 %v1317_v41 }
  0x84   :  { %1173 = vmatprep.subr.bf16.mxu0 %v1318_v42 }
  0x86   :  { %1126 = vmatmul.mubr.bf16.gmra.mrb[4].mxu0 %v1303_v34 }
  0x87   :  { %1129 = vmatprep.mubr.bf16.mxu0 %v1304_v35  ;;  %1174 = vmatpush3.bf16.msra.mxu0 %v1318_v42 }
  0x88   :  { %1175 = vmatprep.subr.bf16.mxu0 %v1319_v43 }
  0x8b   :  { %1176 = vmatpush3.bf16.msra.mxu0 %v1319_v43 }
  0x8c   :  { %1177 = vmatprep.subr.bf16.mxu0 %v1320_v44 }
  0x8e   :  { %1130 = vmatmul.mubr.bf16.gmra.mrb[8].mxu0 %v1305_v36 }
  0x8f   :  { %1133 = vmatprep.mubr.bf16.mxu0 %v1306_v37  ;;  %1178 = vmatpush3.bf16.msra.mxu0 %v1320_v44 }
  0x90   :  { %1179 = vmatprep.subr.bf16.mxu0 %v1321_v45 }
  0x93   :  { %1180 = vmatpush3.bf16.msra.mxu0 %v1321_v45 }
  0x94   :  { %1181 = vmatprep.subr.bf16.mxu0 %v1322_v6 }
  0x96   :  { %1134 = vmatmul.mubr.bf16.gmra.mrb[12].mxu0 %v1307_v38 }
  0x97   :  { %1182 = vmatpush3.bf16.msra.mxu0 %v1322_v6 }
  0x98   :  { %1183 = vmatprep.subr.bf16.mxu0 %v1323_v7 }
  0x9b   :  { %1184 = vmatpush3.bf16.msra.mxu0 %v1323_v7 }
 0x151   :  { %v1123_v46 = vpop.f32.mrb[0].mxu0 }
 0x152   :  { %v257_v47 = vpop.f32.mrb[1].mxu0 }
 0x153   :  { %v1124_v48 = vpop.f32.mrb[2].mxu0 }
 0x154   :  { %v372_v49 = vpack.c.bf16 %v1124_v48, %v1123_v46  ;;  %v260_v50 = vpop.f32.mrb[3].mxu0 }
 0x155   :  { %v371_v51 = vpack.c.bf16 %v260_v50, %v257_v47 }
 0x157   :  { %1153 = vmatprep.mubr.bf16.mxu1 %v371_v51 }
 0x158   :  { %1154 = vmatmul.mubr.bf16.vlgmr.msra.gmra.mrb[0].mxu1 %v372_v49 }
 0x159   :  { %v1127_v52 = vpop.f32.mrb[4].mxu0  ;;  %1260 = vmatpush3.bf16.msra.mxu1 %v1257_v11 }
 0x15a   :  { %v273_v53 = vpop.f32.mrb[5].mxu0  ;;  %1262 = vmatprep.subr.bf16.mxu1 %v1261_v13 }
 0x15b   :  { %v1128_v54 = vpop.f32.mrb[6].mxu0 }
 0x15c   :  { %v374_v55 = vpack.c.bf16 %v1128_v54, %v1127_v52  ;;  %v276_v56 = vpop.f32.mrb[7].mxu0 }
 0x15d   :  { %v373_v57 = vpack.c.bf16 %v276_v56, %v273_v53  ;;  %1264 = vmatpush3.bf16.msra.mxu1 %v1261_v13 }
 0x15e   :  { %1266 = vmatprep.subr.bf16.mxu1 %v1265_v16 }
 0x15f   :  { %1157 = vmatprep.mubr.bf16.mxu1 %v373_v57 }
 0x160   :  { %1158 = vmatmul.mubr.bf16.gmra.mrb[4].mxu1 %v374_v55 }
 0x161   :  { %v1131_v58 = vpop.f32.mrb[8].mxu0  ;;  %1268 = vmatpush3.bf16.msra.mxu1 %v1265_v16 }
 0x162   :  { %v289_v59 = vpop.f32.mrb[9].mxu0  ;;  %1270 = vmatprep.subr.bf16.mxu1 %v1269_v19 }
 0x163   :  { %v1132_v60 = vpop.f32.mrb[10].mxu0 }
 0x164   :  { %v376_v61 = vpack.c.bf16 %v1132_v60, %v1131_v58  ;;  %v292_v62 = vpop.f32.mrb[11].mxu0 }
 0x165   :  { %v375_v63 = vpack.c.bf16 %v292_v62, %v289_v59  ;;  %1272 = vmatpush3.bf16.msra.mxu1 %v1269_v19 }
 0x166   :  { %1274 = vmatprep.subr.bf16.mxu1 %v1273_v22 }
 0x167   :  { %1161 = vmatprep.mubr.bf16.mxu1 %v375_v63 }
 0x168   :  { %1162 = vmatmul.mubr.bf16.gmra.mrb[8].mxu1 %v376_v61 }
 0x169   :  { %v1135_v0 = vpop.f32.mrb[12].mxu0  ;;  %1276 = vmatpush3.bf16.msra.mxu1 %v1273_v22  ;;  %v785_v22 = vld [vmem:[#allocation11 + $0x70] sm:$0xff] }
 0x16a   :  { %v305_v1 = vpop.f32.mrb[13].mxu0  ;;  %1278 = vmatprep.subr.bf16.mxu1 %v1277_v25  ;;  %v1285_v24 = vpack.c.bf16 %v786_v23, %v785_v22 }
 0x16b   :  { %v1136_v2 = vpop.f32.mrb[14].mxu0 }
 0x16c   :  { %v378_v3 = vpack.c.bf16 %v1136_v2, %v1135_v0  ;;  %v308_v4 = vpop.f32.mrb[15].mxu0 }
 0x16d   :  { %v377_v5 = vpack.c.bf16 %v308_v4, %v305_v1  ;;  %1280 = vmatpush3.bf16.msra.mxu1 %v1277_v25  ;;  %v1657_v25 = vld [vmem:[%s1710_s5] ss:$0 sm:$0xff]  ;;  %s1529_s5 = smov [#allocation12]  }
 0x16e   :  { %1282 = vmatprep.subr.bf16.mxu1 %v1281_v28  ;;  %s969_s26 = sshll.u32 %s1529_s5, 4  ;;  %s970_s26 = int_to_ptr.vmem [resolvable:$true] %s969_s26 }
 0x16f   :  { %1165 = vmatprep.mubr.bf16.mxu1 %v377_v5  ;;  %s1466_s27 = scalar_lea.vmem %s970_s26, 2048  ;;  %p1471_p13 = scmp.lt.s32.totalorder %s970_s26, %s970_s26 }
 0x170   :  { %1166 = vmatmul.mubr.bf16.gmra.mrb[12].mxu1 %v378_v3  ;;  %p1467_p12 = scmp.ne.s32.totalorder %s970_s26, %s1466_s27  ;;  %p1472_p0 = scmp.lt.s32.totalorder %s1466_s27, %s1466_s27 }
 0x171   :  { %1284 = vmatpush3.bf16.msra.mxu1 %v1281_v28 }
 0x172   :  { %1286 = vmatprep.subr.bf16.mxu1 %v1285_v24  ;;  %p1473_p1 = por %p1472_p0, %p1471_p13 }
 0x174   :  { %p1474_p2 = pnand %p1473_p1, %p1467_p12 }
 0x175   :  { %1288 = vmatpush3.bf16.msra.mxu1 %v1285_v24 }
 0x22b   :  { %v1155_v30 = vpop.f32.mrb[0].mxu1 }
 0x22c   :  { %v493_v31 = vadd.f32 %v1155_v30, %v1007_v29  ;;  %v484_v32 = vpop.f32.mrb[1].mxu1 }
 0x22d   :  { %v485_v33 = vadd.f32 %v1007_v29, %v484_v32  ;;  %v1156_v34 = vpop.f32.mrb[2].mxu1 }
 0x22e   :  { %v496_v35 = vadd.f32 %v1156_v34, %v1007_v29  ;;  %v487_v36 = vpop.f32.mrb[3].mxu1  ;;  %v549_v38 = vmax.f32 %v493_v31, 0.0 }
 0x22f   :  { %v488_v37 = vadd.f32 %v1007_v29, %v487_v36  ;;  %v547_v40 = vmax.f32 %v485_v33, 0.0 }
 0x230   :  { %v550_v39 = vmax.f32 %v496_v35, 0.0 }
 0x231   :  { %v548_v41 = vmax.f32 %v488_v37, 0.0 }
 0x232   :  { %v564_v42 = vpack.c.bf16 %v550_v39, %v549_v38 }
 0x233   :  { %v563_v43 = vpack.c.bf16 %v548_v41, %v547_v40  ;;  %v1159_v44 = vpop.f32.mrb[4].mxu1 }
 0x234   :  { %v509_v45 = vadd.f32 %v1159_v44, %v1007_v29  ;;  %v500_v46 = vpop.f32.mrb[5].mxu1 }
 0x235   :  { %v501_v47 = vadd.f32 %v1007_v29, %v500_v46  ;;  %v1160_v48 = vpop.f32.mrb[6].mxu1  ;;  %1185 = vmatprep.mubr.bf16.mxu0 %v563_v43 }
 0x236   :  { %v512_v49 = vadd.f32 %v1160_v48, %v1007_v29  ;;  %v503_v50 = vpop.f32.mrb[7].mxu1  ;;  %1186 = vmatmul.mubr.bf16.vlgmr.msra.gmra.mrb[16].mxu0 %v564_v42  ;;  %v553_v52 = vmax.f32 %v509_v45, 0.0 }
 0x237   :  { %v504_v51 = vadd.f32 %v1007_v29, %v503_v50  ;;  %v551_v54 = vmax.f32 %v501_v47, 0.0 }
 0x238   :  { %v554_v53 = vmax.f32 %v512_v49, 0.0 }
 0x239   :  { %v552_v55 = vmax.f32 %v504_v51, 0.0 }
 0x23a   :  { %v566_v56 = vpack.c.bf16 %v554_v53, %v553_v52 }
 0x23b   :  { %v565_v57 = vpack.c.bf16 %v552_v55, %v551_v54  ;;  %v1163_v58 = vpop.f32.mrb[8].mxu1 }
 0x23c   :  { %v525_v59 = vadd.f32 %v1163_v58, %v1007_v29  ;;  %v516_v60 = vpop.f32.mrb[9].mxu1 }
 0x23d   :  { %v517_v61 = vadd.f32 %v1007_v29, %v516_v60  ;;  %v1164_v62 = vpop.f32.mrb[10].mxu1  ;;  %1189 = vmatprep.mubr.bf16.mxu0 %v565_v57 }
 0x23e   :  { %v528_v63 = vadd.f32 %v1164_v62, %v1007_v29  ;;  %v519_v0 = vpop.f32.mrb[11].mxu1  ;;  %1190 = vmatmul.mubr.bf16.gmra.mrb[20].mxu0 %v566_v56  ;;  %v557_v2 = vmax.f32 %v525_v59, 0.0 }
 0x23f   :  { %v520_v1 = vadd.f32 %v1007_v29, %v519_v0  ;;  %v555_v4 = vmax.f32 %v517_v61, 0.0 }
 0x240   :  { %v558_v3 = vmax.f32 %v528_v63, 0.0 }
 0x241   :  { %v556_v5 = vmax.f32 %v520_v1, 0.0 }
 0x242   :  { %v568_v6 = vpack.c.bf16 %v558_v3, %v557_v2 }
 0x243   :  { %v567_v7 = vpack.c.bf16 %v556_v5, %v555_v4  ;;  %v1167_v8 = vpop.f32.mrb[12].mxu1 }
 0x244   :  { %v541_v9 = vadd.f32 %v1167_v8, %v1007_v29  ;;  %v532_v10 = vpop.f32.mrb[13].mxu1 }
 0x245   :  { %v533_v11 = vadd.f32 %v1007_v29, %v532_v10  ;;  %v1168_v12 = vpop.f32.mrb[14].mxu1  ;;  %1193 = vmatprep.mubr.bf16.mxu0 %v567_v7 }
 0x246   :  { %v544_v13 = vadd.f32 %v1168_v12, %v1007_v29  ;;  %v535_v14 = vpop.f32.mrb[15].mxu1  ;;  %1194 = vmatmul.mubr.bf16.gmra.mrb[24].mxu0 %v568_v6  ;;  %v561_v16 = vmax.f32 %v541_v9, 0.0 }
 0x247   :  { %v536_v15 = vadd.f32 %v1007_v29, %v535_v14  ;;  %v559_v18 = vmax.f32 %v533_v11, 0.0 }
 0x248   :  { %v562_v17 = vmax.f32 %v544_v13, 0.0 }
 0x249   :  { %v560_v19 = vmax.f32 %v536_v15, 0.0 }
 0x24a   :  { %v570_v20 = vpack.c.bf16 %v562_v17, %v561_v16 }
 0x24b   :  { %v569_v21 = vpack.c.bf16 %v560_v19, %v559_v18 }
 0x24d   :  { %1197 = vmatprep.mubr.bf16.mxu0 %v569_v21 }
 0x24e   :  { %1198 = vmatmul.mubr.bf16.gmra.mrb[28].mxu0 %v570_v20 }
 0x309   :  { %v1187_v26 = vpop.f32.mrb[16].mxu0 }
 0x30a   :  { %v685_v27 = vadd.f32 %v1187_v26, %v1657_v25  ;;  %v676_v28 = vpop.f32.mrb[17].mxu0 }
 0x30b   :  { %v677_v29 = vadd.f32 %v1657_v25, %v676_v28  ;;  %v1188_v30 = vpop.f32.mrb[18].mxu0 }
 0x30c   :  { %v741_v31 = vmax.f32 %v685_v27, 0.0  ;;  %v688_v32 = vadd.f32 %v1188_v30, %v1657_v25  ;;  %v679_v33 = vpop.f32.mrb[19].mxu0 }
 0x30d   :  { %v739_v34 = vmax.f32 %v677_v29, 0.0  ;;  %v680_v35 = vadd.f32 %v1657_v25, %v679_v33 }
 0x30e   :  { %757 = vst [vmem:[#allocation12 + $0x10] sm:$0xff] %v741_v31  ;;  %v742_v36 = vmax.f32 %v688_v32, 0.0 }
 0x30f   :  { %755 = vst [vmem:[#allocation12] sm:$0xff] %v739_v34  ;;  %v740_v37 = vmax.f32 %v680_v35, 0.0  ;;  %1233 = vmatprep.mubr.f32.mxu1 %v739_v34 }
 0x310   :  { %758 = vst [vmem:[#allocation12 + $0x18] sm:$0xff] %v742_v36 }
 0x311   :  { %756 = vst [vmem:[#allocation12 + $0x8] sm:$0xff] %v740_v37  ;;  %v1191_v38 = vpop.f32.mrb[20].mxu0  ;;  %1234 = vmatmul.mubr.f32.vlgmr.msra.gmra.mrb[16].mxu1 %v740_v37 }
 0x312   :  { %v701_v39 = vadd.f32 %v1191_v38, %v1657_v25  ;;  %v692_v40 = vpop.f32.mrb[21].mxu0  ;;  %1236 = vmatprep.mubr.f32.mxu1 %v741_v31 }
 0x313   :  { %v693_v41 = vadd.f32 %v1657_v25, %v692_v40  ;;  %v1192_v42 = vpop.f32.mrb[22].mxu0 }
 0x314   :  { %v745_v43 = vmax.f32 %v701_v39, 0.0  ;;  %v704_v44 = vadd.f32 %v1192_v42, %v1657_v25  ;;  %v695_v45 = vpop.f32.mrb[23].mxu0 }
 0x315   :  { %v743_v46 = vmax.f32 %v693_v41, 0.0  ;;  %v696_v47 = vadd.f32 %v1657_v25, %v695_v45  ;;  %1237 = vmatmul.mubr.f32.gmra.mrb[18].mxu1 %v742_v36 }
 0x316   :  { %761 = vst [vmem:[#allocation12 + $0x30] sm:$0xff] %v745_v43  ;;  %v746_v48 = vmax.f32 %v704_v44, 0.0 }
 0x317   :  { %759 = vst [vmem:[#allocation12 + $0x20] sm:$0xff] %v743_v46  ;;  %v744_v49 = vmax.f32 %v696_v47, 0.0  ;;  %1239 = vmatprep.mubr.f32.mxu1 %v743_v46 }
 0x318   :  { %762 = vst [vmem:[#allocation12 + $0x38] sm:$0xff] %v746_v48 }
 0x319   :  { %760 = vst [vmem:[#allocation12 + $0x28] sm:$0xff] %v744_v49  ;;  %v1195_v50 = vpop.f32.mrb[24].mxu0  ;;  %1240 = vmatmul.mubr.f32.gmra.mrb[20].mxu1 %v744_v49 }
 0x31a   :  { %v717_v51 = vadd.f32 %v1195_v50, %v1657_v25  ;;  %v708_v52 = vpop.f32.mrb[25].mxu0  ;;  %1242 = vmatprep.mubr.f32.mxu1 %v745_v43 }
 0x31b   :  { %v709_v53 = vadd.f32 %v1657_v25, %v708_v52  ;;  %v1196_v54 = vpop.f32.mrb[26].mxu0 }
 0x31c   :  { %v749_v55 = vmax.f32 %v717_v51, 0.0  ;;  %v720_v56 = vadd.f32 %v1196_v54, %v1657_v25  ;;  %v711_v57 = vpop.f32.mrb[27].mxu0 }
 0x31d   :  { %v747_v58 = vmax.f32 %v709_v53, 0.0  ;;  %v712_v59 = vadd.f32 %v1657_v25, %v711_v57  ;;  %1243 = vmatmul.mubr.f32.gmra.mrb[22].mxu1 %v746_v48 }
 0x31e   :  { %765 = vst [vmem:[#allocation12 + $0x50] sm:$0xff] %v749_v55  ;;  %v750_v60 = vmax.f32 %v720_v56, 0.0 }
 0x31f   :  { %763 = vst [vmem:[#allocation12 + $0x40] sm:$0xff] %v747_v58  ;;  %v748_v61 = vmax.f32 %v712_v59, 0.0  ;;  %1245 = vmatprep.mubr.f32.mxu1 %v747_v58 }
 0x320   :  { %766 = vst [vmem:[#allocation12 + $0x58] sm:$0xff] %v750_v60 }
 0x321   :  { %764 = vst [vmem:[#allocation12 + $0x48] sm:$0xff] %v748_v61  ;;  %v1199_v62 = vpop.f32.mrb[28].mxu0  ;;  %1246 = vmatmul.mubr.f32.gmra.mrb[24].mxu1 %v748_v61 }
 0x322   :  { %v733_v63 = vadd.f32 %v1199_v62, %v1657_v25  ;;  %v724_v0 = vpop.f32.mrb[29].mxu0  ;;  %1248 = vmatprep.mubr.f32.mxu1 %v749_v55 }
 0x323   :  { %v725_v1 = vadd.f32 %v1657_v25, %v724_v0  ;;  %v1200_v2 = vpop.f32.mrb[30].mxu0 }
 0x324   :  { %v753_v3 = vmax.f32 %v733_v63, 0.0  ;;  %v736_v4 = vadd.f32 %v1200_v2, %v1657_v25  ;;  %v727_v5 = vpop.f32.mrb[31].mxu0 }
 0x325   :  { %v751_v6 = vmax.f32 %v725_v1, 0.0  ;;  %v728_v7 = vadd.f32 %v1657_v25, %v727_v5  ;;  %1249 = vmatmul.mubr.f32.gmra.mrb[26].mxu1 %v750_v60 }
 0x326   :  { %769 = vst [vmem:[#allocation12 + $0x70] sm:$0xff] %v753_v3  ;;  %v754_v8 = vmax.f32 %v736_v4, 0.0 }
 0x327   :  { %767 = vst [vmem:[#allocation12 + $0x60] sm:$0xff] %v751_v6  ;;  %v752_v9 = vmax.f32 %v728_v7, 0.0  ;;  %1251 = vmatprep.mubr.f32.mxu1 %v751_v6 }
 0x328   :  { %770 = vst [vmem:[#allocation12 + $0x78] sm:$0xff] %v754_v8 }
 0x329   :  { %768 = vst [vmem:[#allocation12 + $0x68] sm:$0xff] %v752_v9  ;;  %1252 = vmatmul.mubr.f32.gmra.mrb[28].mxu1 %v752_v9 }
 0x32a   :  { %1254 = vmatprep.mubr.f32.mxu1 %v753_v3 }
 0x32d   :  { %1255 = vmatmul.mubr.f32.gmra.mrb[30].mxu1 %v754_v8 }
 0x32e   :  { %1477 = shalt.err (!%p1474_p2)
}
 0x32f   :  { %s1478_s1 = scalar_lea.hbm %s1712_s7, 2048 }
 0x330   :  { %p1479_p3 = scmp.ne.s32.totalorder %s1712_s7, %s1478_s1  ;;  %p1482_p4 = scmp.lt.u32.totalorder %s1478_s1, %s1712_s7 }
 0x332   :  { %p1484_p5 = pnand %p1482_p4, %p1479_p3 }
 0x334   :  { %1487 = shalt.err (!%p1484_p5)
}
 0x335   :  { %975 = dma.vmem_to_hbm [thread:$0]  %s970_s26, 2048, %s1712_s7, [#allocation5], %s1521_s15, %s1521_s15, %s1522_s16  }
 0x336   :  { %s1530_s7 = smov [#allocation13]  }
 0x337   :  { %s981_s14 = sshll.u32 %s1530_s7, 4  ;;  %s982_s14 = int_to_ptr.vmem [resolvable:$true] %s981_s14 }
 0x338   :  { %s1488_s17 = scalar_lea.vmem %s982_s14, 2048  ;;  %p1493_p7 = scmp.lt.s32.totalorder %s982_s14, %s982_s14 }
 0x339   :  { %p1489_p6 = scmp.ne.s32.totalorder %s982_s14, %s1488_s17  ;;  %p1494_p8 = scmp.lt.s32.totalorder %s1488_s17, %s1488_s17 }
 0x33b   :  { %p1495_p9 = por %p1494_p8, %p1493_p7 }
 0x33d   :  { %p1496_p10 = pnand %p1495_p9, %p1489_p6 }
 0x3e4   :  { %v1235_v10 = vpop.f32.mrb[16].mxu1 }
 0x3e5   :  { %1324 = vtanh.f32 %v1235_v10  ;;  %v853_v11 = vpop.f32.mrb[17].mxu1 }
 0x3e6   :  { %1326 = vtanh.f32 %v853_v11 }
 0x3e8   :  { %v1238_v12 = vpop.f32.mrb[18].mxu1 }
 0x3e9   :  { %1328 = vtanh.f32 %v1238_v12  ;;  %v863_v13 = vpop.f32.mrb[19].mxu1 }
 0x3ea   :  { %1330 = vtanh.f32 %v863_v13 }
 0x3ec   :  { %v1241_v14 = vpop.f32.mrb[20].mxu1 }
 0x3ed   :  { %1332 = vtanh.f32 %v1241_v14  ;;  %v873_v15 = vpop.f32.mrb[21].mxu1 }
 0x3ee   :  { %1334 = vtanh.f32 %v873_v15 }
 0x3ef   :  { %v1325_v16 = vpop.eup %1324 }
 0x3f0   :  { %v1327_v17 = vpop.eup %1326  ;;  %949 = vst [vmem:[#allocation13 + $0x8] sm:$0xff] %v1325_v16  ;;  %v1244_v18 = vpop.f32.mrb[22].mxu1 }
 0x3f1   :  { %948 = vst [vmem:[#allocation13] sm:$0xff] %v1327_v17  ;;  %1336 = vtanh.f32 %v1244_v18  ;;  %v883_v19 = vpop.f32.mrb[23].mxu1 }
 0x3f2   :  { %1338 = vtanh.f32 %v883_v19 }
 0x3f3   :  { %v1329_v20 = vpop.eup %1328 }
 0x3f4   :  { %v1331_v21 = vpop.eup %1330  ;;  %951 = vst [vmem:[#allocation13 + $0x18] sm:$0xff] %v1329_v20  ;;  %v1247_v22 = vpop.f32.mrb[24].mxu1 }
 0x3f5   :  { %950 = vst [vmem:[#allocation13 + $0x10] sm:$0xff] %v1331_v21  ;;  %1340 = vtanh.f32 %v1247_v22  ;;  %v893_v23 = vpop.f32.mrb[25].mxu1 }
 0x3f6   :  { %1342 = vtanh.f32 %v893_v23 }
 0x3f7   :  { %v1333_v24 = vpop.eup %1332 }
 0x3f8   :  { %v1335_v25 = vpop.eup %1334  ;;  %953 = vst [vmem:[#allocation13 + $0x28] sm:$0xff] %v1333_v24  ;;  %v1250_v26 = vpop.f32.mrb[26].mxu1 }
 0x3f9   :  { %952 = vst [vmem:[#allocation13 + $0x20] sm:$0xff] %v1335_v25  ;;  %1344 = vtanh.f32 %v1250_v26  ;;  %v903_v27 = vpop.f32.mrb[27].mxu1 }
 0x3fa   :  { %1346 = vtanh.f32 %v903_v27 }
 0x3fb   :  { %v1337_v28 = vpop.eup %1336 }
 0x3fc   :  { %v1339_v29 = vpop.eup %1338  ;;  %955 = vst [vmem:[#allocation13 + $0x38] sm:$0xff] %v1337_v28  ;;  %v1253_v30 = vpop.f32.mrb[28].mxu1 }
 0x3fd   :  { %954 = vst [vmem:[#allocation13 + $0x30] sm:$0xff] %v1339_v29  ;;  %1348 = vtanh.f32 %v1253_v30  ;;  %v913_v31 = vpop.f32.mrb[29].mxu1 }
 0x3fe   :  { %1350 = vtanh.f32 %v913_v31 }
 0x3ff   :  { %v1341_v32 = vpop.eup %1340 }
 0x400   :  { %v1343_v33 = vpop.eup %1342  ;;  %957 = vst [vmem:[#allocation13 + $0x48] sm:$0xff] %v1341_v32  ;;  %v1256_v34 = vpop.f32.mrb[30].mxu1 }
 0x401   :  { %956 = vst [vmem:[#allocation13 + $0x40] sm:$0xff] %v1343_v33  ;;  %1352 = vtanh.f32 %v1256_v34  ;;  %v923_v35 = vpop.f32.mrb[31].mxu1 }
 0x402   :  { %1354 = vtanh.f32 %v923_v35 }
 0x403   :  { %v1345_v36 = vpop.eup %1344 }
 0x404   :  { %v1347_v37 = vpop.eup %1346  ;;  %959 = vst [vmem:[#allocation13 + $0x58] sm:$0xff] %v1345_v36 }
 0x405   :  { %958 = vst [vmem:[#allocation13 + $0x50] sm:$0xff] %v1347_v37 }
 0x407   :  { %v1349_v38 = vpop.eup %1348 }
 0x408   :  { %v1351_v39 = vpop.eup %1350  ;;  %961 = vst [vmem:[#allocation13 + $0x68] sm:$0xff] %v1349_v38 }
 0x409   :  { %960 = vst [vmem:[#allocation13 + $0x60] sm:$0xff] %v1351_v39 }
 0x40b   :  { %v1353_v40 = vpop.eup %1352 }
 0x40c   :  { %v1355_v41 = vpop.eup %1354  ;;  %963 = vst [vmem:[#allocation13 + $0x78] sm:$0xff] %v1353_v40 }
 0x40d   :  { %962 = vst [vmem:[#allocation13 + $0x70] sm:$0xff] %v1355_v41 }
 0x40e   :  { %1499 = shalt.err (!%p1496_p10)
}
 0x40f   :  { %s1500_s21 = scalar_lea.hbm %s1713_s8, 2048 }
 0x410   :  { %p1501_p11 = scmp.ne.s32.totalorder %s1713_s8, %s1500_s21  ;;  %p1504_p12 = scmp.lt.u32.totalorder %s1500_s21, %s1713_s8 }
 0x412   :  { %p1506_p13 = pnand %p1504_p12, %p1501_p11 }
 0x414   :  { %1509 = shalt.err (!%p1506_p13)
}
 0x415   :  { %987 = dma.vmem_to_hbm [thread:$0]  %s982_s14, 2048, %s1713_s8, [#allocation14], %s1521_s15, %s1521_s15, %s1522_s16  }
 0x416   :  { %1516 = dma.done.wait [#allocation5], 2048  }
 0x417   :  { %1517 = vsyncadd [#allocation5], 4294965248 }
 0x418   :  { %1518 = dma.done.wait [#allocation14], 2048  }
 0x419   :  { %1519 = vsyncadd [#allocation14], 4294965248 }
 0x41a   :  { %994 = vsyncpa [#allocation4], 1 }
 0x41b   :  { %995 = vsyncpa [#allocation7], 1 }
 0x41c   :  { %996 = vsyncpa [#allocation10], 1 }
 0x41d   :  { %997 = vsyncpa [#allocation5], 1 }
 0x41e   :  { %998 = vsyncpa [#allocation14], 1 }

</bundles_post_ra>
